<compile_context>
chip_gen: v7x
topology: tpu7x:2x2x1
jax: 0.10.0
libtpu: 0.0.40
codegen_flags: <defaults>
</compile_context>

<pallas_src>
import functools
import math

import numpy as np
import jax
import jax.numpy as jnp
from jax import lax
from jax.experimental import pallas as pl
from jax.experimental.pallas import tpu as pltpu


def _mha_kernel(q_ref, k_ref, v_ref, mask_ref,
                wq_ref, bq_ref, wk_ref, bk_ref, wv_ref, bv_ref,
                wo_ref, bo_ref,
                out_ref, attn_ref,
                *, scale, eps):
    # Block shapes: q/out -> (1, tS, D); k/v -> (1, S, D); mask/attn -> (1, tS, S)
    q_in = q_ref[0].astype(jnp.float32)          # (tS, D)
    k_in = k_ref[0].astype(jnp.float32)          # (S, D)
    v_in = v_ref[0].astype(jnp.float32)          # (S, D)

    # QKV projections (MXU, f32 accumulation).
    query = jnp.dot(q_in, wq_ref[...], preferred_element_type=jnp.float32) + bq_ref[...]
    key = jnp.dot(k_in, wk_ref[...], preferred_element_type=jnp.float32) + bk_ref[...]
    value = jnp.dot(v_in, wv_ref[...], preferred_element_type=jnp.float32) + bv_ref[...]

    # scores = query @ key^T / sqrt(d_k)  (contract on the feature axis of both;
    # avoids materializing an explicit transpose).
    scores = lax.dot_general(query, key, (((1,), (1,)), ((), ())),
                             preferred_element_type=jnp.float32) * scale       # (tS, S)

    # masked_fill_(attn_mask, 1e-9): positions where mask != 0 become 1e-9.
    scores = jnp.where(mask_ref[0] != 0, jnp.float32(1e-9), scores)

    # Numerically-stable softmax along the key axis.
    m = jnp.max(scores, axis=-1, keepdims=True)
    e = jnp.exp(scores - m)
    denom = jnp.sum(e, axis=-1, keepdims=True)
    attn = e / denom                              # exact; pl.reciprocal(approx=True) is a perf option
    attn_ref[0] = attn.astype(attn_ref.dtype)

    # context = attn @ V, residual with the raw input q (requires H == D).
    context = jnp.dot(attn, value, preferred_element_type=jnp.float32) + q_in  # (tS, D)

    # Output projection + LayerNorm (default gamma=1, beta=0).
    proj = jnp.dot(context, wo_ref[...], preferred_element_type=jnp.float32) + bo_ref[...]
    mu = jnp.mean(proj, axis=-1, keepdims=True)
    var = jnp.mean(jnp.square(proj - mu), axis=-1, keepdims=True)
    out_ref[0] = ((proj - mu) * lax.rsqrt(var + eps)).astype(out_ref.dtype)


def _q_tile(seq_len: int) -> int:
    # Pick a query-row tile: lane/sublane friendly (multiple of 128, then S itself),
    # keeping VMEM use decoupled from S and giving the grid enough parallel grains.
    for t in (512, 256, 128):
        if seq_len % t == 0:
            return t
    return seq_len  # small / irregular S: one tile (block == full extent is always legal)


def multi_head_attention_forward(q, k, v, params, attn_mask=None, *, d_k):
    """q, k, v: (B, S, d_model). params: PyTorch-layout (out,in) weights + biases."""
    B, S, D = q.shape
    wq, bq, wk, bk, wv, bv, wo, bo = params
    H = wq.shape[0]                      # n_heads * d_k
    assert H == D, "residual `context += q` requires n_heads*d_k == d_model"

    # Kernel-side layouts: weights transposed to (in, out); biases as (1, out).
    wq_t, wk_t, wv_t, wo_t = wq.T, wk.T, wv.T, wo.T
    bq_r, bk_r, bv_r = bq.reshape(1, H), bk.reshape(1, H), bv.reshape(1, H)
    bo_r = bo.reshape(1, D)

    if attn_mask is None:
        mask = jnp.zeros((B, S, S), jnp.float32)
    else:
        mask = attn_mask.astype(jnp.float32)
        if mask.ndim == 2:
            mask = jnp.broadcast_to(mask[None], (B, S, S))

    tS = _q_tile(S)
    n_t = S // tS
    grid = (B, n_t)  # batch outer, query-tiles inner: K/V + weights stay resident across the inner axis

    kernel = functools.partial(_mha_kernel, scale=1.0 / math.sqrt(d_k), eps=1e-5)

    flops = B * (8 * S * D * H + 4 * S * S * H)
    bytes_accessed = 4 * (3 * B * S * D + B * S * S          # q,k,v + mask reads
                          + 4 * D * H + 3 * H + D            # weights + biases
                          + B * S * D + B * S * S)           # out + attn writes
    cost = pl.CostEstimate(flops=flops,
                           transcendentals=B * S * S + B * S,
                           bytes_accessed=bytes_accessed)

    out, attn = pl.pallas_call(
        kernel,
        out_shape=(jax.ShapeDtypeStruct((B, S, D), q.dtype),
                   jax.ShapeDtypeStruct((B, S, S), jnp.float32)),
        grid_spec=pltpu.PrefetchScalarGridSpec(
            num_scalar_prefetch=0,
            grid=grid,
            in_specs=[
                pl.BlockSpec((1, tS, D), lambda b, t: (b, t, 0)),   # q (query rows tiled)
                pl.BlockSpec((1, S, D), lambda b, t: (b, 0, 0)),    # k (resident across inner axis)
                pl.BlockSpec((1, S, D), lambda b, t: (b, 0, 0)),    # v
                pl.BlockSpec((1, tS, S), lambda b, t: (b, t, 0)),   # attn_mask
                pl.BlockSpec((D, H), lambda b, t: (0, 0)),          # Wq^T (fetched once)
                pl.BlockSpec((1, H), lambda b, t: (0, 0)),          # bq
                pl.BlockSpec((D, H), lambda b, t: (0, 0)),          # Wk^T
                pl.BlockSpec((1, H), lambda b, t: (0, 0)),          # bk
                pl.BlockSpec((D, H), lambda b, t: (0, 0)),          # Wv^T
                pl.BlockSpec((1, H), lambda b, t: (0, 0)),          # bv
                pl.BlockSpec((H, D), lambda b, t: (0, 0)),          # Wo^T
                pl.BlockSpec((1, D), lambda b, t: (0, 0)),          # bo
            ],
            out_specs=[
                pl.BlockSpec((1, tS, D), lambda b, t: (b, t, 0)),   # output
                pl.BlockSpec((1, tS, S), lambda b, t: (b, t, 0)),   # attention weights
            ],
        ),
        compiler_params=pltpu.CompilerParams(
            dimension_semantics=("parallel", "parallel"),
        ),
        cost_estimate=cost,
    )(q, k, v, mask, wq_t, bq_r, wk_t, bk_r, wv_t, bv_r, wo_t, bo_r)
    return out, attn


if __name__ == "__main__":
    d_model = 32
    d_k = 8
    n_heads = 4            # n_heads * d_k == d_model (required by the residual add)
    batch = 2
    seq = 8
    H = n_heads * d_k

    root = jax.random.PRNGKey(0)
    keys = jax.random.split(root, 11)
    w_scale = 1.0 / math.sqrt(d_model)

    q = jax.random.normal(keys[0], (batch, seq, d_model), jnp.float32)
    k = jax.random.normal(keys[1], (batch, seq, d_model), jnp.float32)
    v = jax.random.normal(keys[2], (batch, seq, d_model), jnp.float32)

    wq = jax.random.normal(keys[3], (H, d_model), jnp.float32) * w_scale
    bq = jax.random.normal(keys[4], (H,), jnp.float32) * w_scale
    wk = jax.random.normal(keys[5], (H, d_model), jnp.float32) * w_scale
    bk = jax.random.normal(keys[6], (H,), jnp.float32) * w_scale
    wv = jax.random.normal(keys[7], (H, d_model), jnp.float32) * w_scale
    bv = jax.random.normal(keys[8], (H,), jnp.float32) * w_scale
    wo = jax.random.normal(keys[9], (d_model, H), jnp.float32) * w_scale
    bo = jax.random.normal(keys[10], (d_model,), jnp.float32) * w_scale

    # Deterministic mask: mask out strictly-future keys (upper triangle).
    attn_mask = jnp.broadcast_to(
        jnp.triu(jnp.ones((seq, seq), jnp.float32), k=1)[None], (batch, seq, seq))

    params = (wq, bq, wk, bk, wv, bv, wo, bo)
    out, attn = multi_head_attention_forward(q, k, v, params, attn_mask, d_k=d_k)
    out, attn = jax.block_until_ready((out, attn))

    # Plain-JAX reference with identical semantics.
    def ref_forward(q_, k_, v_, mask_):
        query = q_ @ wq.T + bq
        key_p = k_ @ wk.T + bk
        value = v_ @ wv.T + bv
        scores = jnp.einsum("bqh,bkh->bqk", query, key_p) / math.sqrt(d_k)
        scores = jnp.where(mask_ != 0, 1e-9, scores)
        a = jax.nn.softmax(scores, axis=-1)
        ctx = jnp.einsum("bqk,bkh->bqh", a, value) + q_
        proj = ctx @ wo.T + bo
        mu = proj.mean(-1, keepdims=True)
        var = ((proj - mu) ** 2).mean(-1, keepdims=True)
        return (proj - mu) / jnp.sqrt(var + 1e-5), a

    ref_out, ref_attn = ref_forward(q, k, v, attn_mask)
    np.testing.assert_allclose(np.asarray(attn), np.asarray(ref_attn), rtol=1e-4, atol=1e-5)
    np.testing.assert_allclose(np.asarray(out), np.asarray(ref_out), rtol=1e-4, atol=1e-4)

    print("KERNEL_OK")
</pallas_src>

<mosaic_0001>
module attributes {stable_mosaic.version = 11 : i64} {
  func.func @_mha_kernel(%arg0: i32, %arg1: i32, %arg2: memref<1x8x32xf32, #tpu.memory_space<vmem>>, %arg3: memref<1x8x32xf32, #tpu.memory_space<vmem>>, %arg4: memref<1x8x32xf32, #tpu.memory_space<vmem>>, %arg5: memref<1x8x8xf32, #tpu.memory_space<vmem>>, %arg6: memref<32x32xf32, #tpu.memory_space<vmem>>, %arg7: memref<1x32xf32, #tpu.memory_space<vmem>>, %arg8: memref<32x32xf32, #tpu.memory_space<vmem>>, %arg9: memref<1x32xf32, #tpu.memory_space<vmem>>, %arg10: memref<32x32xf32, #tpu.memory_space<vmem>>, %arg11: memref<1x32xf32, #tpu.memory_space<vmem>>, %arg12: memref<32x32xf32, #tpu.memory_space<vmem>>, %arg13: memref<1x32xf32, #tpu.memory_space<vmem>>, %arg14: memref<1x8x32xf32, #tpu.memory_space<vmem>>, %arg15: memref<1x8x8xf32, #tpu.memory_space<vmem>>) attributes {dimension_semantics = [#tpu.dimension_semantics<parallel>, #tpu.dimension_semantics<parallel>], iteration_bounds = array<i64: 2, 1>, scalar_prefetch = 0 : i64, scratch_operands = 0 : i64, tpu.core_type = #tpu.core_type<tc>, window_params = [{transform_indices = @transform_0, window_bounds = array<i64: 1, 8, 32>}, {transform_indices = @transform_1, window_bounds = array<i64: 1, 8, 32>}, {transform_indices = @transform_2, window_bounds = array<i64: 1, 8, 32>}, {transform_indices = @transform_3, window_bounds = array<i64: 1, 8, 8>}, {pipeline_mode = #tpu.pipeline_mode<synchronous>, transform_indices = @transform_4, window_bounds = array<i64: 32, 32>}, {pipeline_mode = #tpu.pipeline_mode<synchronous>, transform_indices = @transform_5, window_bounds = array<i64: 1, 32>}, {pipeline_mode = #tpu.pipeline_mode<synchronous>, transform_indices = @transform_6, window_bounds = array<i64: 32, 32>}, {pipeline_mode = #tpu.pipeline_mode<synchronous>, transform_indices = @transform_7, window_bounds = array<i64: 1, 32>}, {pipeline_mode = #tpu.pipeline_mode<synchronous>, transform_indices = @transform_8, window_bounds = array<i64: 32, 32>}, {pipeline_mode = #tpu.pipeline_mode<synchronous>, transform_indices = @transform_9, window_bounds = array<i64: 1, 32>}, {pipeline_mode = #tpu.pipeline_mode<synchronous>, transform_indices = @transform_10, window_bounds = array<i64: 32, 32>}, {pipeline_mode = #tpu.pipeline_mode<synchronous>, transform_indices = @transform_11, window_bounds = array<i64: 1, 32>}, {transform_indices = @transform_12, window_bounds = array<i64: 1, 8, 32>}, {transform_indices = @transform_13, window_bounds = array<i64: 1, 8, 8>}]} {
    %c0 = arith.constant 0 : index
    %c0_0 = arith.constant 0 : index
    %c0_1 = arith.constant 0 : index
    %0 = vector.load %arg2[%c0, %c0_0, %c0_1] : memref<1x8x32xf32, #tpu.memory_space<vmem>>, vector<1x8x32xf32>
    %1 = vector.shape_cast %0 : vector<1x8x32xf32> to vector<8x32xf32>
    %c0_2 = arith.constant 0 : index
    %c0_3 = arith.constant 0 : index
    %c0_4 = arith.constant 0 : index
    %2 = vector.load %arg3[%c0_2, %c0_3, %c0_4] : memref<1x8x32xf32, #tpu.memory_space<vmem>>, vector<1x8x32xf32>
    %3 = vector.shape_cast %2 : vector<1x8x32xf32> to vector<8x32xf32>
    %c0_5 = arith.constant 0 : index
    %c0_6 = arith.constant 0 : index
    %c0_7 = arith.constant 0 : index
    %4 = vector.load %arg4[%c0_5, %c0_6, %c0_7] : memref<1x8x32xf32, #tpu.memory_space<vmem>>, vector<1x8x32xf32>
    %5 = vector.shape_cast %4 : vector<1x8x32xf32> to vector<8x32xf32>
    %c0_8 = arith.constant 0 : index
    %c0_9 = arith.constant 0 : index
    %6 = vector.load %arg6[%c0_8, %c0_9] : memref<32x32xf32, #tpu.memory_space<vmem>>, vector<32x32xf32>
    %cst = arith.constant dense<0.000000e+00> : vector<8x32xf32>
    %7 = tpu.matmul %1, %6, %cst {dimension_numbers = #tpu.dot_dimension_numbers<[1], [0], [0], [1], [0, 0, 1, 1], [], []>} : vector<8x32xf32>, vector<32x32xf32>, vector<8x32xf32> -> vector<8x32xf32>
    %c0_10 = arith.constant 0 : index
    %c0_11 = arith.constant 0 : index
    %8 = vector.load %arg7[%c0_10, %c0_11] : memref<1x32xf32, #tpu.memory_space<vmem>>, vector<1x32xf32>
    %9 = vector.broadcast %8 : vector<1x32xf32> to vector<8x32xf32>
    %10 = arith.addf %7, %9 : vector<8x32xf32>
    %c0_12 = arith.constant 0 : index
    %c0_13 = arith.constant 0 : index
    %11 = vector.load %arg8[%c0_12, %c0_13] : memref<32x32xf32, #tpu.memory_space<vmem>>, vector<32x32xf32>
    %cst_14 = arith.constant dense<0.000000e+00> : vector<8x32xf32>
    %12 = tpu.matmul %3, %11, %cst_14 {dimension_numbers = #tpu.dot_dimension_numbers<[1], [0], [0], [1], [0, 0, 1, 1], [], []>} : vector<8x32xf32>, vector<32x32xf32>, vector<8x32xf32> -> vector<8x32xf32>
    %c0_15 = arith.constant 0 : index
    %c0_16 = arith.constant 0 : index
    %13 = vector.load %arg9[%c0_15, %c0_16] : memref<1x32xf32, #tpu.memory_space<vmem>>, vector<1x32xf32>
    %14 = vector.broadcast %13 : vector<1x32xf32> to vector<8x32xf32>
    %15 = arith.addf %12, %14 : vector<8x32xf32>
    %c0_17 = arith.constant 0 : index
    %c0_18 = arith.constant 0 : index
    %16 = vector.load %arg10[%c0_17, %c0_18] : memref<32x32xf32, #tpu.memory_space<vmem>>, vector<32x32xf32>
    %cst_19 = arith.constant dense<0.000000e+00> : vector<8x32xf32>
    %17 = tpu.matmul %5, %16, %cst_19 {dimension_numbers = #tpu.dot_dimension_numbers<[1], [0], [0], [1], [0, 0, 1, 1], [], []>} : vector<8x32xf32>, vector<32x32xf32>, vector<8x32xf32> -> vector<8x32xf32>
    %c0_20 = arith.constant 0 : index
    %c0_21 = arith.constant 0 : index
    %18 = vector.load %arg11[%c0_20, %c0_21] : memref<1x32xf32, #tpu.memory_space<vmem>>, vector<1x32xf32>
    %19 = vector.broadcast %18 : vector<1x32xf32> to vector<8x32xf32>
    %20 = arith.addf %17, %19 : vector<8x32xf32>
    %cst_22 = arith.constant dense<0.000000e+00> : vector<8x8xf32>
    %21 = tpu.matmul %10, %15, %cst_22 {dimension_numbers = #tpu.dot_dimension_numbers<[1], [1], [0], [0], [0, 0, 1, 0], [], []>} : vector<8x32xf32>, vector<8x32xf32>, vector<8x8xf32> -> vector<8x8xf32>
    %cst_23 = arith.constant 0.353553385 : f32
    %22 = vector.broadcast %cst_23 : f32 to vector<8x8xf32>
    %23 = arith.mulf %21, %22 : vector<8x8xf32>
    %c0_24 = arith.constant 0 : index
    %c0_25 = arith.constant 0 : index
    %c0_26 = arith.constant 0 : index
    %24 = vector.load %arg5[%c0_24, %c0_25, %c0_26] : memref<1x8x8xf32, #tpu.memory_space<vmem>>, vector<1x8x8xf32>
    %25 = vector.shape_cast %24 : vector<1x8x8xf32> to vector<8x8xf32>
    %cst_27 = arith.constant 0.000000e+00 : f32
    %26 = vector.broadcast %cst_27 : f32 to vector<8x8xf32>
    %27 = arith.cmpf one, %25, %26 : vector<8x8xf32>
    %cst_28 = arith.constant 9.99999971E-10 : f32
    %28 = vector.broadcast %cst_28 : f32 to vector<8x8xf32>
    %29 = arith.select %27, %28, %23 : vector<8x8xi1>, vector<8x8xf32>
    %cst_29 = arith.constant dense<0xFF800000> : vector<8xf32>
    %30 = vector.multi_reduction <maximumf>, %29, %cst_29 [1] : vector<8x8xf32> to vector<8xf32>
    %31 = vector.shape_cast %30 : vector<8xf32> to vector<8x1xf32>
    %32 = vector.broadcast %31 : vector<8x1xf32> to vector<8x8xf32>
    %33 = arith.subf %29, %32 : vector<8x8xf32>
    %34 = math.exp %33 : vector<8x8xf32>
    %cst_30 = arith.constant dense<0.000000e+00> : vector<8xf32>
    %35 = vector.multi_reduction <add>, %34, %cst_30 [1] : vector<8x8xf32> to vector<8xf32>
    %36 = vector.shape_cast %35 : vector<8xf32> to vector<8x1xf32>
    %37 = vector.broadcast %36 : vector<8x1xf32> to vector<8x8xf32>
    %38 = arith.divf %34, %37 : vector<8x8xf32>
    %c0_31 = arith.constant 0 : index
    %c0_32 = arith.constant 0 : index
    %c0_33 = arith.constant 0 : index
    %39 = vector.load %arg15[%c0_31, %c0_32, %c0_33] : memref<1x8x8xf32, #tpu.memory_space<vmem>>, vector<1x8x8xf32>
    %40 = vector.shape_cast %39 : vector<1x8x8xf32> to vector<8x8xf32>
    %41 = vector.shape_cast %38 : vector<8x8xf32> to vector<1x8x8xf32>
    tpu.vector_store %arg15[%c0_31, %c0_32, %c0_33], %41 {strides = array<i32>} : memref<1x8x8xf32, #tpu.memory_space<vmem>>, vector<1x8x8xf32>,
    %cst_34 = arith.constant dense<0.000000e+00> : vector<8x32xf32>
    %42 = tpu.matmul %38, %20, %cst_34 {dimension_numbers = #tpu.dot_dimension_numbers<[1], [0], [0], [1], [0, 0, 1, 1], [], []>} : vector<8x8xf32>, vector<8x32xf32>, vector<8x32xf32> -> vector<8x32xf32>
    %43 = arith.addf %42, %1 : vector<8x32xf32>
    %c0_35 = arith.constant 0 : index
    %c0_36 = arith.constant 0 : index
    %44 = vector.load %arg12[%c0_35, %c0_36] : memref<32x32xf32, #tpu.memory_space<vmem>>, vector<32x32xf32>
    %cst_37 = arith.constant dense<0.000000e+00> : vector<8x32xf32>
    %45 = tpu.matmul %43, %44, %cst_37 {dimension_numbers = #tpu.dot_dimension_numbers<[1], [0], [0], [1], [0, 0, 1, 1], [], []>} : vector<8x32xf32>, vector<32x32xf32>, vector<8x32xf32> -> vector<8x32xf32>
    %c0_38 = arith.constant 0 : index
    %c0_39 = arith.constant 0 : index
    %46 = vector.load %arg13[%c0_38, %c0_39] : memref<1x32xf32, #tpu.memory_space<vmem>>, vector<1x32xf32>
    %47 = vector.broadcast %46 : vector<1x32xf32> to vector<8x32xf32>
    %48 = arith.addf %45, %47 : vector<8x32xf32>
    %cst_40 = arith.constant dense<0.000000e+00> : vector<8xf32>
    %49 = vector.multi_reduction <add>, %48, %cst_40 [1] : vector<8x32xf32> to vector<8xf32>
    %50 = vector.shape_cast %49 : vector<8xf32> to vector<8x1xf32>
    %cst_41 = arith.constant 3.200000e+01 : f32
    %51 = vector.broadcast %cst_41 : f32 to vector<8x1xf32>
    %52 = arith.divf %50, %51 : vector<8x1xf32>
    %53 = vector.broadcast %52 : vector<8x1xf32> to vector<8x32xf32>
    %54 = arith.subf %48, %53 : vector<8x32xf32>
    %55 = arith.mulf %54, %54 : vector<8x32xf32>
    %cst_42 = arith.constant dense<0.000000e+00> : vector<8xf32>
    %56 = vector.multi_reduction <add>, %55, %cst_42 [1] : vector<8x32xf32> to vector<8xf32>
    %57 = vector.shape_cast %56 : vector<8xf32> to vector<8x1xf32>
    %cst_43 = arith.constant 3.200000e+01 : f32
    %58 = vector.broadcast %cst_43 : f32 to vector<8x1xf32>
    %59 = arith.divf %57, %58 : vector<8x1xf32>
    %60 = vector.broadcast %52 : vector<8x1xf32> to vector<8x32xf32>
    %61 = arith.subf %48, %60 : vector<8x32xf32>
    %cst_44 = arith.constant 9.99999974E-6 : f32
    %62 = vector.broadcast %cst_44 : f32 to vector<8x1xf32>
    %63 = arith.addf %59, %62 : vector<8x1xf32>
    %64 = math.rsqrt %63 : vector<8x1xf32>
    %65 = vector.broadcast %64 : vector<8x1xf32> to vector<8x32xf32>
    %66 = arith.mulf %61, %65 : vector<8x32xf32>
    %c0_45 = arith.constant 0 : index
    %c0_46 = arith.constant 0 : index
    %c0_47 = arith.constant 0 : index
    %67 = vector.load %arg14[%c0_45, %c0_46, %c0_47] : memref<1x8x32xf32, #tpu.memory_space<vmem>>, vector<1x8x32xf32>
    %68 = vector.shape_cast %67 : vector<1x8x32xf32> to vector<8x32xf32>
    %69 = vector.shape_cast %66 : vector<8x32xf32> to vector<1x8x32xf32>
    tpu.vector_store %arg14[%c0_45, %c0_46, %c0_47], %69 {strides = array<i32>} : memref<1x8x32xf32, #tpu.memory_space<vmem>>, vector<1x8x32xf32>,
    return
  }
  func.func @transform_0(%arg0: i32, %arg1: i32) -> (i32, i32, i32) {
    %c0_i32 = arith.constant 0 : i32
    %c0_i32_0 = arith.constant 0 : i32
    return %arg0, %arg1, %c0_i32 : i32, i32, i32
  }
  func.func @transform_1(%arg0: i32, %arg1: i32) -> (i32, i32, i32) {
    %c0_i32 = arith.constant 0 : i32
    %c0_i32_0 = arith.constant 0 : i32
    %c0_i32_1 = arith.constant 0 : i32
    return %arg0, %c0_i32, %c0_i32_0 : i32, i32, i32
  }
  func.func @transform_2(%arg0: i32, %arg1: i32) -> (i32, i32, i32) {
    %c0_i32 = arith.constant 0 : i32
    %c0_i32_0 = arith.constant 0 : i32
    %c0_i32_1 = arith.constant 0 : i32
    return %arg0, %c0_i32, %c0_i32_0 : i32, i32, i32
  }
  func.func @transform_3(%arg0: i32, %arg1: i32) -> (i32, i32, i32) {
    %c0_i32 = arith.constant 0 : i32
    %c0_i32_0 = arith.constant 0 : i32
    return %arg0, %arg1, %c0_i32 : i32, i32, i32
  }
  func.func @transform_4(%arg0: i32, %arg1: i32) -> (i32, i32) {
    %c0_i32 = arith.constant 0 : i32
    %c0_i32_0 = arith.constant 0 : i32
    %c0_i32_1 = arith.constant 0 : i32
    return %c0_i32, %c0_i32_0 : i32, i32
  }
  func.func @transform_5(%arg0: i32, %arg1: i32) -> (i32, i32) {
    %c0_i32 = arith.constant 0 : i32
    %c0_i32_0 = arith.constant 0 : i32
    %c0_i32_1 = arith.constant 0 : i32
    return %c0_i32, %c0_i32_0 : i32, i32
  }
  func.func @transform_6(%arg0: i32, %arg1: i32) -> (i32, i32) {
    %c0_i32 = arith.constant 0 : i32
    %c0_i32_0 = arith.constant 0 : i32
    %c0_i32_1 = arith.constant 0 : i32
    return %c0_i32, %c0_i32_0 : i32, i32
  }
  func.func @transform_7(%arg0: i32, %arg1: i32) -> (i32, i32) {
    %c0_i32 = arith.constant 0 : i32
    %c0_i32_0 = arith.constant 0 : i32
    %c0_i32_1 = arith.constant 0 : i32
    return %c0_i32, %c0_i32_0 : i32, i32
  }
  func.func @transform_8(%arg0: i32, %arg1: i32) -> (i32, i32) {
    %c0_i32 = arith.constant 0 : i32
    %c0_i32_0 = arith.constant 0 : i32
    %c0_i32_1 = arith.constant 0 : i32
    return %c0_i32, %c0_i32_0 : i32, i32
  }
  func.func @transform_9(%arg0: i32, %arg1: i32) -> (i32, i32) {
    %c0_i32 = arith.constant 0 : i32
    %c0_i32_0 = arith.constant 0 : i32
    %c0_i32_1 = arith.constant 0 : i32
    return %c0_i32, %c0_i32_0 : i32, i32
  }
  func.func @transform_10(%arg0: i32, %arg1: i32) -> (i32, i32) {
    %c0_i32 = arith.constant 0 : i32
    %c0_i32_0 = arith.constant 0 : i32
    %c0_i32_1 = arith.constant 0 : i32
    return %c0_i32, %c0_i32_0 : i32, i32
  }
  func.func @transform_11(%arg0: i32, %arg1: i32) -> (i32, i32) {
    %c0_i32 = arith.constant 0 : i32
    %c0_i32_0 = arith.constant 0 : i32
    %c0_i32_1 = arith.constant 0 : i32
    return %c0_i32, %c0_i32_0 : i32, i32
  }
  func.func @transform_12(%arg0: i32, %arg1: i32) -> (i32, i32, i32) {
    %c0_i32 = arith.constant 0 : i32
    %c0_i32_0 = arith.constant 0 : i32
    return %arg0, %arg1, %c0_i32 : i32, i32, i32
  }
  func.func @transform_13(%arg0: i32, %arg1: i32) -> (i32, i32, i32) {
    %c0_i32 = arith.constant 0 : i32
    %c0_i32_0 = arith.constant 0 : i32
    return %arg0, %arg1, %c0_i32 : i32, i32, i32
  }
}

</mosaic_0001>

<bundles_post_ra>
// kernel: tpu_custom_call.1
= control target key start
LH: loop header
LB: loop body
LE: loop exit
PB: predicated region body
PF: predicated region fallthrough
CT: control target
= control target key end

     0   :  { %s2572_s0 = inlined_call_operand.hbm [shape: f32[2,8,32], index: 0, kind: input, shape index: {}]   ;;  %s2573_s1 = inlined_call_operand.hbm [shape: f32[2,8,32], index: 1, kind: input, shape index: {}]   ;;  %s2574_s2 = inlined_call_operand.hbm [shape: f32[2,8,32], index: 2, kind: input, shape index: {}]   ;;  %s2575_s3 = inlined_call_operand.hbm [shape: f32[2,8,8], index: 3, kind: input, shape index: {}]   ;;  %s2576_s4 = inlined_call_operand.hbm [shape: f32[32,32], index: 4, kind: input, shape index: {}]   ;;  %s2577_s5 = inlined_call_operand.vmem [shape: f32[1,32], index: 5, kind: input, shape index: {}]   ;;  %s2578_s6 = inlined_call_operand.hbm [shape: f32[32,32], index: 6, kind: input, shape index: {}]   ;;  %s2579_s7 = inlined_call_operand.vmem [shape: f32[1,32], index: 7, kind: input, shape index: {}]   ;;  %s2580_s8 = inlined_call_operand.hbm [shape: f32[32,32], index: 8, kind: input, shape index: {}]   ;;  %s2581_s9 = inlined_call_operand.vmem [shape: f32[1,32], index: 9, kind: input, shape index: {}]   ;;  %s2582_s10 = inlined_call_operand.vmem [shape: f32[32,32], index: 10, kind: input, shape index: {}]   ;;  %s2583_s11 = inlined_call_operand.vmem [shape: f32[1,32], index: 11, kind: input, shape index: {}]   ;;  %s2584_s12 = inlined_call_operand.hbm [shape: f32[2,8,32], index: 12, kind: output, shape index: {0}]   ;;  %s2585_s13 = inlined_call_operand.hbm [shape: f32[2,8,8], index: 13, kind: output, shape index: {1}]  }
   0x1   :  { %2609 = sst [smem:[#allocation31_spill]] %s2572_s0 }
   0x2   :  { %2610 = sst [smem:[#allocation32_spill]] %s2573_s1 }
   0x3   :  { %2611 = sst [smem:[#allocation33_spill]] %s2576_s4 }
   0x4   :  { %2612 = sst [smem:[#allocation34_spill]] %s2578_s6 }
   0x5   :  { %2613 = sst [smem:[#allocation35_spill]] %s2581_s9 }
   0x6   :  { %2614 = sst [smem:[#allocation36_spill]] %s2582_s10 }
   0x7   :  { %2615 = sst [smem:[#allocation37_spill]] %s2583_s11 }
   0x8   :  { %2616 = sst [smem:[#allocation38_spill]] %s2584_s12 }
   0x9   :  { %2617 = sst [smem:[#allocation39_spill]] %s2585_s13 }
   0xa   :  { %19 = vsyncpa [#allocation3], 0 }
   0xb   :  { %21 = vsyncpa [#allocation3 + $0x1], 0 }
   0xc   :  { %22 = vsyncpa [#allocation6], 0 }
   0xd   :  { %24 = vsyncpa [#allocation6 + $0x1], 0 }
   0xe   :  { %25 = vsyncpa [#allocation9], 0 }
   0xf   :  { %27 = vsyncpa [#allocation9 + $0x1], 0 }
  0x10   :  { %28 = vsyncpa [#allocation12], 0 }
  0x11   :  { %29 = vsyncpa [#allocation4], 0 }
  0x12   :  { %31 = vsyncpa [#allocation4 + $0x1], 0 }
  0x13   :  { %32 = vsyncpa [#allocation16], 0 }
  0x14   :  { %34 = vsyncpa [#allocation16 + $0x1], 0  ;;  %s2091_s25 = smov 0   ;;  %s2093_s26 = smov 0  }
  0x15   :  { %s2095_s27 = smov 0   ;;  %s2097_s28 = smov 0  }
  0x16   :  { %s2099_s29 = smov 0   ;;  %s2101_s30 = smov 0  }
  0x17 LB: > { %2618 = sst [smem:[#allocation24_spill]] %s1985_s25  ;;  %s2122_s14 = sadd.s32 4294967295, %s2005_s30   ;;  %s2005_s30 = sphi %s2101_s30, %s40_s30   ;;  %s2001_s29 = sphi %s2099_s29, %s2667_s29   ;;  %s1997_s28 = sphi %s2097_s28, %s2666_s28   ;;  %s1993_s27 = sphi %s2095_s27, %s2670_s27   ;;  %s1989_s26 = sphi %s2093_s26, %s2669_s26   ;;  %s1985_s25 = sphi %s2091_s25, %s2668_s25  }
  0x18   : > { %2619 = sst [smem:[#allocation25_spill]] %s1997_s28  ;;  %s1404_s15 = sadd.s32 4294967294, %s2005_s30  }
  0x19   : > { %2620 = sst [smem:[#allocation26_spill]] %s2001_s29  ;;  %p74_p0 = scmp.ne.s32.totalorder %s1989_s26, %s1985_s25 }
  0x1a   : > { %p2590_p1 = scmp.eq.s32.totalorder %s2122_s14, 0  ;;  %p354_p3 = scmp.eq.s32.totalorder %s1404_s15, 1 }
  0x1b   : > { %p1405_p5 = scmp.ge.s32.totalorder %s2005_s30, 1  ;;  %p389_p7 = scmp.lt.s32.totalorder %s2005_s30, 3 }
  0x1c   : > { %p2131_p4 = por %p2590_p1, %p74_p0  ;;  %p2136_p6 = por %p354_p3, %p74_p0 }
  0x1d   : > { %p2141_p8 = pnand %p1405_p5, %p389_p7  ;;  %s2007_s19 = smov [#allocation10]  }
  0x1e   : > { %s2621_s16 = scalar_select %p2131_p4, 1, 0 }
  0x1f   : > { %s2622_s17 = scalar_select %p2136_p6, 1, 0 }
  0x20   : > { %s2624_s18 = scalar_select %p2141_p8, 1, 0 }
  0x21   : > { %2623 = sst [smem:[#allocation27_spill]] %s2622_s17  ;;  %s401_s20 = sshll.u32 %s2007_s19, 4  ;;  %s2145_s20 = int_to_ptr.vmem [resolvable:$true] %s401_s20 }
  0x22   : > { %p1571_p9 = pneg %p2141_p8  ;;  %s2008_s22 = smov [#allocation11]  }
  0x23   : > { %s417_s23 = sshll.u32 %s2008_s22, 4  ;;  %s2626_s4 = sld [smem:[#allocation33_spill]]  ;;  %s2156_s23 = int_to_ptr.vmem [resolvable:$true] %s417_s23 }
  0x24   : > { %p2152_p11 = pnand %p1571_p9, %p2590_p1 }
  0x26   : > { %s2625_s21 = scalar_select %p2152_p11, 1, 0 }
  0x27   : > { %p2166_p13 = pneg %p2152_p11 }
  0x29   : > { %s1671_s17 = scalar_lea.hbm %s2626_s4, 512 }
  0x2a   : > { %p1672_p12 = scmp.ne.s32.totalorder %s2626_s4, %s1671_s17  ;;  %p1678_p5 = scmp.lt.u32.totalorder %s1671_s17, %s2626_s4 }
  0x2b   : > { %s2627_s12 = scalar_select %p2166_p13, 1, 0 }
  0x2c   : > { %p1674_p0 = pnand %p2166_p13, %p1672_p12 }
  0x2e   : > { %p1675_p3 = pneg %p1674_p0 }
  0x30   : > { %p1680_p7 = pnand %p1678_p5, %p1675_p3 }
  0x32   : > { %1683 = shalt.err (!%p1680_p7)
}
  0x33   : > { %s1684_s25 = scalar_lea.vmem %s2145_s20, 512  ;;  %p1692_p2 = scmp.lt.s32.totalorder %s2145_s20, %s2145_s20 }
  0x34   : > { %p1685_p9 = scmp.ne.s32.totalorder %s2145_s20, %s1684_s25  ;;  %p1693_p6 = scmp.lt.s32.totalorder %s1684_s25, %s1684_s25 }
  0x36   : > { %p1687_p10 = pnand %p1685_p9, %p2166_p13  ;;  %p1694_p12 = por %p1693_p6, %p1692_p2 }
  0x38   : > { %p1688_p1 = pneg %p1687_p10 }
  0x3a   : > { %p1695_p0 = pnand %p1694_p12, %p1688_p1 }
  0x3c   : > { %1698 = shalt.err (!%p1695_p0)
}
  0x3d   : > { %s2593_s24 = smov 128   ;;  %s2594_s13 = smov 8  }
  0x3e   : > { %1574 = dma.hbm_to_vmem [thread:$0]  (!%p2152_p11), %s2626_s4, 512, %s2145_s20, [#allocation9], %s2593_s24, %s2593_s24, %s2594_s13  }
  0x3f   : > { %s2628_s6 = sld [smem:[#allocation34_spill]] }
  0x45   : > { %s1699_s25 = scalar_lea.hbm %s2628_s6, 512 }
  0x46   : > { %p1700_p1 = scmp.ne.s32.totalorder %s2628_s6, %s1699_s25  ;;  %p1706_p10 = scmp.lt.u32.totalorder %s1699_s25, %s2628_s6 }
  0x48   : > { %p1702_p2 = pnand %p1700_p1, %p2166_p13 }
  0x4a   : > { %p1703_p6 = pneg %p1702_p2 }
  0x4c   : > { %p1708_p3 = pnand %p1706_p10, %p1703_p6 }
  0x4e   : > { %1711 = shalt.err (!%p1708_p3)
}
  0x4f   : > { %s1712_s20 = scalar_lea.vmem %s2156_s23, 512  ;;  %p1720_p12 = scmp.lt.s32.totalorder %s2156_s23, %s2156_s23 }
  0x50   : > { %p1713_p5 = scmp.ne.s32.totalorder %s2156_s23, %s1712_s20  ;;  %p1721_p0 = scmp.lt.s32.totalorder %s1712_s20, %s1712_s20 }
  0x52   : > { %p1715_p7 = pnand %p1713_p5, %p2166_p13  ;;  %p1722_p1 = por %p1721_p0, %p1720_p12 }
  0x54   : > { %p1716_p9 = pneg %p1715_p7 }
  0x56   : > { %p1723_p2 = pnand %p1722_p1, %p1716_p9 }
  0x58   : > { %1726 = shalt.err (!%p1723_p2)
}
  0x59   : > { %1577 = dma.hbm_to_vmem [thread:$0]  (!%p2152_p11), %s2628_s6, 512, %s2156_s23, [#allocation12], %s2593_s24, %s2593_s24, %s2594_s13  }
  0x5a   : > { %s52_s11 = sadd.s32 1, %s2001_s29  ;;  %s61_s28 = sadd.s32 1, %s1993_s27 }
  0x5b   : > { %p54_p6 = scmp.ge.s32.totalorder %s52_s11, 2  ;;  %p68_p10 = scmp.ne.s32.totalorder %s1993_s27, %s1989_s26 }
  0x5c   : > { %p69_p3 = scmp.eq.s32.totalorder %s2005_s30, 0  ;;  %p1604_p5 = scmp.lt.s32.totalorder %s2005_s30, 2 }
  0x5d   : > { %s2672_s11 = smov (%p54_p6, %s52_s11), 0  ;;  %p2630_p9 = scmp.eq.s32.totalorder %s2122_s14, 1 }
  0x5e   : > { %2629 = sst [smem:[#allocation28_spill]] %s2672_s11  ;;  %p70_p7 = por %p69_p3, %p68_p10 }
  0x5f   : > { %p2226_p12 = por %p2630_p9, %p68_p10  ;;  %s56_s15 = ssub.s32 %s2001_s29, %s2672_s11 }
  0x60   : > { %s2595_s23 = sand.u32 1, %s1993_s27   ;;  %p59_p0 = scmp.eq.s32.totalorder %s56_s15, 0 }
  0x61   : > { %s2631_s17 = scalar_select %p2226_p12, 1, 0 }
  0x62   : > { %s2235_s19 = sshll.u32 %s2595_s23, 3  ;;  %s2238_s22 = sshll.u32 %s2001_s29, 7 }
  0x63   : > { %2632 = sst [smem:[#allocation29_spill]] %s2631_s17  ;;  %p2240_p1 = pnand %p1604_p5, %p70_p7 }
  0x64   : > { %s2245_s20 = scalar_select %p59_p0, %s1993_s27, %s61_s28  }
  0x65   : > { %s2633_s25 = scalar_select %p2240_p1, 1, 0 }
  0x66   : > { %2634 = sst [smem:[#allocation30_spill]] %s2245_s20  ;;  %s2600_s9 = sand.u32 1, %s2005_s30  }
  0x67   : > { %s2635_s1 = sld [smem:[#allocation32_spill]]  ;;  %s479_s15 = scalar_lea.vmem [#allocation5], %s2235_s19 }
  0x68   : > { %s486_s23 = sshll.u32 %s479_s15, 4  ;;  %s2259_s4 = scalar_lea.sflag [#allocation6], %s2600_s9  ;;  %s2255_s23 = int_to_ptr.vmem [resolvable:$true] %s486_s23 }
  0x69   : > { %p2265_p6 = pneg %p2240_p1 }
  0x6d   : > { %s2252_s13 = scalar_lea.hbm %s2635_s1, %s2238_s22  ;;  %s1732_s15 = scalar_lea.hbm %s2635_s1, 256 }
  0x6e   : > { %s1727_s6 = scalar_lea.hbm %s2252_s13, 128  ;;  %p1733_p5 = scmp.lt.u32.totalorder %s2252_s13, %s2635_s1 }
  0x6f   : > { %p1728_p2 = scmp.ne.s32.totalorder %s2252_s13, %s1727_s6  ;;  %p1734_p7 = scmp.lt.u32.totalorder %s1732_s15, %s1727_s6 }
  0x70   : > { %p1736_p0 = scmp.lt.u32.totalorder %s1727_s6, %s2252_s13 }
  0x71   : > { %p1730_p10 = pnand %p2265_p6, %p1728_p2  ;;  %p1735_p9 = por %p1734_p7, %p1733_p5 }
  0x73   : > { %p1731_p3 = pneg %p1730_p10  ;;  %p1737_p12 = por %p1736_p0, %p1735_p9 }
  0x75   : > { %p1738_p4 = pnand %p1737_p12, %p1731_p3 }
  0x77   : > { %1741 = shalt.err (!%p1738_p4)
}
  0x78   : > { %s1742_s9 = scalar_lea.vmem %s2255_s23, 128  ;;  %s2011_s24 = smov [#allocation5]  }
  0x79   : > { %p1743_p2 = scmp.ne.s32.totalorder %s2255_s23, %s1742_s9  ;;  %s1747_s10 = sshll.u32 %s2011_s24, 4  ;;  %s1748_s10 = int_to_ptr.vmem [resolvable:$false] %s1747_s10 }
  0x7a   : > { %s1749_s29 = scalar_lea.vmem %s1748_s10, 256  ;;  %p1750_p11 = scmp.lt.s32.totalorder %s2255_s23, %s1748_s10 }
  0x7b   : > { %p1745_p10 = pnand %p1743_p2, %p2265_p6  ;;  %p1751_p13 = scmp.lt.s32.totalorder %s1749_s29, %s1742_s9 }
  0x7d   : > { %p1746_p8 = pneg %p1745_p10  ;;  %p1752_p5 = por %p1751_p13, %p1750_p11 }
  0x7f   : > { %p1753_p7 = pnand %p1752_p5, %p1746_p8 }
  0x81   : > { %1756 = shalt.err (!%p1753_p7)
}
  0x82   : > { %1587 = dma.hbm_to_vmem [thread:$0]  (!%p2240_p1), %s2252_s13, 128, %s2255_s23, %s2259_s4  }
  0x83   : > { %s2012_s6 = smov [#allocation13]   ;;  %s2637_s0 = sld [smem:[#allocation31_spill]] }
  0x84   : > { %s433_s11 = sshll.u32 %s2012_s6, 4  ;;  %s1757_s29 = scalar_lea.hbm %s2580_s8, 512  ;;  %s434_s11 = int_to_ptr.vmem [resolvable:$true] %s433_s11 }
  0x85   : > { %p1758_p4 = scmp.ne.s32.totalorder %s2580_s8, %s1757_s29  ;;  %p2638_p8 = scmp.ne.s32.totalorder %s2627_s12, 0 }
  0x86   : > { %p1764_p12 = scmp.lt.u32.totalorder %s1757_s29, %s2580_s8 }
  0x87   : > { %p1760_p11 = pnand %p1758_p4, %p2638_p8 }
  0x89   : > { %s2293_s1 = scalar_lea.hbm %s2637_s0, %s2238_s22  ;;  %p1761_p13 = pneg %p1760_p11 }
  0x8b   : > { %p1766_p3 = pnand %p1764_p12, %p1761_p13 }
  0x8d   : > { %1769 = shalt.err (!%p1766_p3)
}
  0x8e   : > { %s1770_s6 = scalar_lea.vmem %s434_s11, 512  ;;  %p1778_p10 = scmp.lt.s32.totalorder %s434_s11, %s434_s11 }
  0x8f   : > { %p1771_p9 = scmp.ne.s32.totalorder %s434_s11, %s1770_s6  ;;  %p1779_p5 = scmp.lt.s32.totalorder %s1770_s6, %s1770_s6 }
  0x91   : > { %p1773_p0 = pnand %p1771_p9, %p2638_p8  ;;  %p1780_p7 = por %p1779_p5, %p1778_p10 }
  0x93   : > { %p1774_p2 = pneg %p1773_p0 }
  0x95   : > { %p1781_p1 = pnand %p1780_p7, %p1774_p2 }
  0x97   : > { %1784 = shalt.err (!%p1781_p1)
}
  0x98   : > { %p2639_p4 = scmp.ne.s32.totalorder %s2625_s21, 0  ;;  %s2640_s17 = smov 8  }
  0x99   : > { %s2641_s20 = smov 128   ;;  %s460_s12 = scalar_lea.vmem [#allocation2], %s2235_s19 }
  0x9a   : > { %1580 = dma.hbm_to_vmem [thread:$0]  (!%p2639_p4), %s2580_s8, 512, %s434_s11, [#allocation12], %s2641_s20, %s2641_s20, %s2640_s17  }
  0x9b   : > { %s468_s9 = sshll.u32 %s460_s12, 4  ;;  %s2323_s29 = scalar_lea.hbm %s2574_s2, %s2238_s22  ;;  %s2317_s9 = int_to_ptr.vmem [resolvable:$true] %s468_s9 }
  0x9c   : > { %s2642_s13 = sand.u32 1, %s1993_s27   ;;  %s1785_s6 = scalar_lea.hbm %s2293_s1, 128 }
  0x9d   : > { %s457_s23 = scalar_lea.sflag [#allocation3], %s2642_s13  ;;  %p1786_p1 = scmp.ne.s32.totalorder %s2293_s1, %s1785_s6 }
  0x9e   : > { %s1790_s11 = scalar_lea.hbm %s2637_s0, 256  ;;  %p1791_p13 = scmp.lt.u32.totalorder %s2293_s1, %s2637_s0 }
  0x9f   : > { %p1788_p8 = pnand %p1786_p1, %p2265_p6  ;;  %p1792_p12 = scmp.lt.u32.totalorder %s1790_s11, %s1785_s6 }
  0xa0   : > { %p1794_p9 = scmp.lt.u32.totalorder %s1785_s6, %s2293_s1 }
  0xa1   : > { %p1789_p11 = pneg %p1788_p8  ;;  %p1793_p3 = por %p1792_p12, %p1791_p13 }
  0xa3   : > { %p1795_p0 = por %p1794_p9, %p1793_p3 }
  0xa5   : > { %p1796_p2 = pnand %p1795_p0, %p1789_p11 }
  0xa7   : > { %1799 = shalt.err (!%p1796_p2)
}
  0xa8   : > { %s1800_s12 = scalar_lea.vmem %s2317_s9, 128  ;;  %s2013_s21 = smov [#allocation2]  }
  0xa9   : > { %p1801_p10 = scmp.ne.s32.totalorder %s2317_s9, %s1800_s12  ;;  %s1805_s10 = sshll.u32 %s2013_s21, 4  ;;  %s1806_s10 = int_to_ptr.vmem [resolvable:$false] %s1805_s10 }
  0xaa   : > { %s1807_s13 = scalar_lea.vmem %s1806_s10, 256  ;;  %p1808_p4 = scmp.lt.s32.totalorder %s2317_s9, %s1806_s10 }
  0xab   : > { %p1803_p5 = pnand %p1801_p10, %p2265_p6  ;;  %p1809_p1 = scmp.lt.s32.totalorder %s1807_s13, %s1800_s12 }
  0xad   : > { %p1804_p7 = pneg %p1803_p5  ;;  %p1810_p8 = por %p1809_p1, %p1808_p4 }
  0xaf   : > { %p1811_p13 = pnand %p1810_p8, %p1804_p7 }
  0xb1   : > { %1814 = shalt.err (!%p1811_p13)
}
  0xb2   : > { %p2643_p11 = scmp.ne.s32.totalorder %s2633_s25, 0  ;;  %s497_s6 = scalar_lea.vmem [#allocation7], %s2235_s19 }
  0xb3   : > { %s504_s15 = sshll.u32 %s497_s6, 4  ;;  %s2353_s17 = scalar_lea.hbm %s2575_s3, %s2238_s22  ;;  %s505_s15 = int_to_ptr.vmem [resolvable:$true] %s504_s15 }
  0xb4   : > { %1584 = dma.hbm_to_vmem [thread:$0]  (!%p2643_p11), %s2293_s1, 128, %s2317_s9, %s457_s23  }
  0xb5   : > { %s1815_s20 = scalar_lea.hbm %s2323_s29, 128  ;;  %s1820_s10 = scalar_lea.hbm %s2574_s2, 256 }
  0xb6   : > { %p1816_p12 = scmp.ne.s32.totalorder %s2323_s29, %s1815_s20  ;;  %p1821_p0 = scmp.lt.u32.totalorder %s2323_s29, %s2574_s2 }
  0xb7   : > { %p1822_p2 = scmp.lt.u32.totalorder %s1820_s10, %s1815_s20  ;;  %p1824_p5 = scmp.lt.u32.totalorder %s1815_s20, %s2323_s29 }
  0xb8   : > { %p1818_p3 = pnand %p1816_p12, %p2265_p6 }
  0xb9   : > { %p1823_p10 = por %p1822_p2, %p1821_p0 }
  0xba   : > { %p1819_p9 = pneg %p1818_p3 }
  0xbb   : > { %p1825_p7 = por %p1824_p5, %p1823_p10 }
  0xbd   : > { %p1826_p4 = pnand %p1825_p7, %p1819_p9 }
  0xbf   : > { %1829 = shalt.err (!%p1826_p4)
}
  0xc0   : > { %s1830_s1 = scalar_lea.vmem %s505_s15, 128  ;;  %s2014_s22 = smov [#allocation7]  }
  0xc1   : > { %p1831_p1 = scmp.ne.s32.totalorder %s505_s15, %s1830_s1  ;;  %s1835_s9 = sshll.u32 %s2014_s22, 4  ;;  %s1836_s9 = int_to_ptr.vmem [resolvable:$false] %s1835_s9 }
  0xc2   : > { %s1837_s23 = scalar_lea.vmem %s1836_s9, 256  ;;  %p1838_p12 = scmp.lt.s32.totalorder %s505_s15, %s1836_s9 }
  0xc3   : > { %p1833_p8 = pnand %p1831_p1, %p2265_p6  ;;  %p1839_p3 = scmp.lt.s32.totalorder %s1837_s23, %s1830_s1 }
  0xc5   : > { %p1834_p13 = pneg %p1833_p8  ;;  %p1840_p11 = por %p1839_p3, %p1838_p12 }
  0xc7   : > { %p1841_p0 = pnand %p1840_p11, %p1834_p13 }
  0xc9   : > { %1844 = shalt.err (!%p1841_p0)
}
  0xca   : > { %p2644_p2 = scmp.ne.s32.totalorder %s2633_s25, 0  ;;  %s515_s0 = scalar_lea.vmem [#allocation8], %s2235_s19 }
  0xcb   : > { %s523_s6 = sshll.u32 %s515_s0, 4  ;;  %s2645_s24 = sand.u32 1, %s2005_s30   ;;  %s524_s6 = int_to_ptr.vmem [resolvable:$true] %s523_s6 }
  0xcc   : > { %1590 = dma.hbm_to_vmem [thread:$0]  (!%p2644_p2), %s2323_s29, 128, %s505_s15, %s2259_s4  }
  0xcd   : > { %s512_s11 = scalar_lea.sflag [#allocation9], %s2645_s24  ;;  %s1845_s20 = scalar_lea.hbm %s2353_s17, 128 }
  0xce   : > { %p1846_p11 = scmp.ne.s32.totalorder %s2353_s17, %s1845_s20  ;;  %s1850_s10 = scalar_lea.hbm %s2575_s3, 256 }
  0xcf   : > { %p1851_p5 = scmp.lt.u32.totalorder %s2353_s17, %s2575_s3  ;;  %p1852_p7 = scmp.lt.u32.totalorder %s1850_s10, %s1845_s20 }
  0xd0   : > { %p1848_p9 = pnand %p1846_p11, %p2265_p6  ;;  %p1854_p1 = scmp.lt.u32.totalorder %s1845_s20, %s2353_s17 }
  0xd1   : > { %p1853_p4 = por %p1852_p7, %p1851_p5 }
  0xd2   : > { %p1849_p10 = pneg %p1848_p9 }
  0xd3   : > { %p1855_p8 = por %p1854_p1, %p1853_p4 }
  0xd5   : > { %p1856_p13 = pnand %p1855_p8, %p1849_p10 }
  0xd7   : > { %1859 = shalt.err (!%p1856_p13)
}
  0xd8   : > { %s1860_s4 = scalar_lea.vmem %s524_s6, 128  ;;  %s2015_s19 = smov [#allocation8]  }
  0xd9   : > { %p1861_p12 = scmp.ne.s32.totalorder %s524_s6, %s1860_s4  ;;  %s1865_s29 = sshll.u32 %s2015_s19, 4  ;;  %s1866_s29 = int_to_ptr.vmem [resolvable:$false] %s1865_s29 }
  0xda   : > { %s1867_s15 = scalar_lea.vmem %s1866_s29, 256  ;;  %p1868_p11 = scmp.lt.s32.totalorder %s524_s6, %s1866_s29 }
  0xdb   : > { %p1863_p3 = pnand %p1861_p12, %p2265_p6  ;;  %p1869_p9 = scmp.lt.s32.totalorder %s1867_s15, %s1860_s4 }
  0xdd   : > { %p1864_p0 = pneg %p1863_p3  ;;  %p1870_p2 = por %p1869_p9, %p1868_p11 }
  0xdf   : > { %p1871_p5 = pnand %p1870_p2, %p1864_p0 }
  0xe1   : > { %1874 = shalt.err (!%p1871_p5)
}
  0xe2   : > { %p2646_p7 = scmp.ne.s32.totalorder %s2633_s25, 0  ;;  %p2647_p10 = scmp.ne.s32.totalorder %s2624_s18, 0 }
  0xe3   : > { %s2396_s28 = sand.u32 (!%p2647_p10), 1, %s1989_s26   ;;  %p2648_p6 = scmp.ne.s32.totalorder (!%p2647_p10), %s2621_s16, 0 }
  0xe4   : > { %1593 = dma.hbm_to_vmem [thread:$0]  (!%p2646_p7), %s2353_s17, 128, %s524_s6, %s512_s11  }
  0xe5   : > { %532 = sbr.rel (%p2647_p10) target bundleno = 1756 (0x6dc), region = 68  ;;  %s2399_s22 = sshll.u32 (!%p2647_p10), %s2396_s28, 3 }
  0xe6   : > { %s535_s9 = scalar_lea.sflag (!%p2647_p10), [#allocation3], %s2396_s28  ;;  %s538_s23 = scalar_lea.vmem (!%p2647_p10), [#allocation2], %s2399_s22 }
  0xec   : > { %1956 = dma.done.wait (%p2648_p6), %s535_s9, 128  }
  0xed   : > { %1958 = vsyncadd (%p2648_p6), %s535_s9, 4294967168  ;;  %s543_s18 = sand.u32 1, %s2122_s14   ;;  %s547_s17 = scalar_lea.vmem [#allocation5], %s2399_s22 }
  0xee   : > { %s544_s25 = scalar_lea.sflag [#allocation6], %s543_s18 }
  0xef   : > { %1960 = dma.done.wait (%p2648_p6), %s544_s25, 256  }
  0xf0   : > { %1962 = vsyncadd (%p2648_p6), %s544_s25, 4294967040  ;;  %s556_s0 = scalar_lea.vmem [#allocation7], %s2399_s22  ;;  %s562_s6 = scalar_lea.sflag [#allocation9], %s543_s18 }
  0xf1   : > { %s565_s24 = scalar_lea.vmem [#allocation8], %s2399_s22 }
  0xf2   : > { %1964 = dma.done.wait (%p2648_p6), %s562_s6, 128  }
  0xf3   : > { %1966 = vsyncadd (%p2648_p6), %s562_s6, 4294967168  ;;  %p2649_p2 = scmp.eq.s32.totalorder %s2122_s14, 0 }
  0xf5   : > { %1968 = dma.done.wait (%p2649_p2), [#allocation9], 512   ;;  %p2650_p4 = pmov %p2649_p2 }
  0xf6   : > { %p2651_p1 = pmov %p2649_p2 }
  0xf7   : > { %1970 = vsyncadd (%p2650_p4), [#allocation9], 4294966784 }
  0xf8   : > { %1972 = dma.done.wait (%p2651_p1), [#allocation12], 1024   ;;  %p2652_p8 = pmov %p2651_p1 }
  0xf9   : > { %v2016_v0 = vmov 0.0|0.0   ;;  %vm2017_vm0 = vmmov 0   ;;  %v2018_v1 = vmov 0.0   ;;  %v728_v2 = vld [vmem:[#allocation11] sm:$0xff]  ;;  %v729_v3 = vld [vmem:[#allocation11 + $0x8] sm:$0xff]  ;;  %v730_v7 = vld [vmem:[#allocation11 + $0x10] sm:$0xff] }
  0xfa   : > { %1974 = vsyncadd (%p2652_p8), [#allocation12], 4294966272  ;;  %1529 = vmatprep.subr.bf16.mxu1 %v2016_v0  ;;  %1523 = vmatprep.subr.bf16.mxu0 %v2016_v0  ;;  %v643_v4 = vld [vmem:[#allocation10] sm:$0xff]  ;;  %v1530_v5 = vpack.c.bf16 %v729_v3, %v728_v2  ;;  %v644_v6 = vld [vmem:[#allocation10 + $0x8] sm:$0xff]  ;;  %vm654_vm1 = vcmask 261120   ;;  %vm976_vm3 = vcmask 64512  }
  0xfb   : > { %1488 = vmatprep.mubr.msk.f32.mxu1 %vm2017_vm0, %v2018_v1  ;;  %1477 = vmatprep.mubr.msk.f32.mxu0 %vm2017_vm0, %v2018_v1  ;;  %v731_v8 = vld [vmem:[#allocation11 + $0x18] sm:$0xff]  ;;  %v1524_v9 = vpack.c.bf16 %v644_v6, %v643_v4  ;;  %v645_v10 = vld [vmem:[#allocation10 + $0x10] sm:$0xff]  ;;  %v2437_v15 = vld [vmem:[%s538_s23] sm:$0xff]  ;;  %s2653_s10 = sld [smem:[#allocation35_spill]]  ;;  %s2654_s4 = sld [smem:[#allocation36_spill]] }
  0xfc   : > { %v646_v11 = vld [vmem:[#allocation10 + $0x18] sm:$0xff]  ;;  %1531 = vmatpush3.bf16.msra.mxu1 %v1530_v5  ;;  %v1533_v12 = vpack.c.bf16 %v731_v8, %v730_v7  ;;  %v1430_v16 = vld [vmem:[%s2579_s7] ss:$0 sm:$0xff]  ;;  %v813_v25 = vld [vmem:[#allocation13 + $0x8] sm:$0xff]  ;;  %s639_s15 = scalar_lea.vmem [#allocation15], %s2399_s22  ;;  %s2657_s14 = sld [smem:[#allocation29_spill]] }
  0xfd   : > { %1525 = vmatpush3.bf16.msra.mxu0 %v1524_v9  ;;  %1532 = vmatprep.subr.bf16.mxu1 %v2016_v0  ;;  %v1527_v13 = vpack.c.bf16 %v646_v11, %v645_v10  ;;  %v641_v14 = vld [vmem:[%s547_s17] sm:$0xff]  ;;  %v1428_v17 = vld [vmem:[%s2577_s5] ss:$0 sm:$0xff]  ;;  %s2655_s17 = sld [smem:[#allocation25_spill]]  ;;  %s2658_s12 = sld [smem:[#allocation39_spill]] }
  0xfe   : > { %1526 = vmatprep.subr.bf16.mxu0 %v2016_v0  ;;  %v812_v24 = vld [vmem:[#allocation13] sm:$0xff]  ;;  %v814_v26 = vld [vmem:[#allocation13 + $0x10] sm:$0xff]  ;;  %v815_v28 = vld [vmem:[#allocation13 + $0x18] sm:$0xff]  ;;  %s1167_s13 = scalar_lea.sflag [#allocation16], %s2396_s28  ;;  %s2019_s19 = smov [#allocation15]  }
  0xff   : > { %v1536_v27 = vpack.c.bf16 %v813_v25, %v812_v24  ;;  %v1539_v29 = vpack.c.bf16 %v815_v28, %v814_v26  ;;  %v642_v30 = vld [vmem:[%s556_s0] sm:$0xff]  ;;  %v973_v31 = vld [vmem:[%s565_s24] sm:$0xff]  ;;  %s2656_s24 = sld [smem:[#allocation37_spill]]  ;;  %s1879_s29 = sshll.u32 %s2019_s19, 4  ;;  %s1880_s29 = int_to_ptr.vmem [resolvable:$false] %s1879_s29 }
 0x100   : > { %1534 = vmatpush3.bf16.msra.mxu1 %v1533_v12  ;;  %vm974_vm2 = vcmp.ne.f32.partialorder %v973_v31, 0.0  ;;  %s1881_s9 = scalar_lea.vmem %s1880_s29, 256 }
 0x101   : > { %1528 = vmatpush3.bf16.msra.mxu0 %v1527_v13  ;;  %1502 = vmatprep.subr.mxu1 %v2018_v1  ;;  %v1432_v43 = vld [vmem:[%s2653_s10] ss:$0 sm:$0xff]  ;;  %v1063_v47 = vld [vmem:[%s2654_s4 + $0x8] sm:$0xff]  ;;  %v1064_v52 = vld [vmem:[%s2654_s4 + $0x10] sm:$0xff]  ;;  %s1195_s10 = sshll.u32 %s639_s15, 4  ;;  %s1196_s10 = int_to_ptr.vmem [resolvable:$true] %s1195_s10 }
 0x102   : > { %1535 = vmatprep.subr.bf16.mxu0 %v2016_v0  ;;  %v1062_v46 = vld [vmem:[%s2654_s4] sm:$0xff]  ;;  %v1065_v53 = vld [vmem:[%s2654_s4 + $0x18] sm:$0xff]  ;;  %s1875_s1 = scalar_lea.vmem %s1196_s10, 128  ;;  %p2659_p12 = scmp.ne.s32.totalorder %s2657_s14, 0 }
 0x103   : > { %1489 = vmatmul.mubr.msk.f32.vlgmr.msra.gmra.mrb[0].mxu1 %vm654_vm1, %v641_v14  ;;  %v1542_v48 = vpack.c.bf16 %v1063_v47, %v1062_v46  ;;  %v1545_v54 = vpack.c.bf16 %v1065_v53, %v1064_v52  ;;  %s1441_s16 = sshll.u32 %s2655_s17, 7  ;;  %p1876_p13 = scmp.ne.s32.totalorder %s1196_s10, %s1875_s1 }
 0x104   : > { %1478 = vmatmul.mubr.msk.f32.vlgmr.msra.gmra.mrb[0].mxu0 %vm654_vm1, %v2437_v15  ;;  %1504 = vmatprep.mubr.msk.f32.mxu1 %vm2017_vm0, %v2018_v1  ;;  %s2496_s21 = scalar_lea.hbm %s2658_s12, %s1441_s16  ;;  %p1882_p11 = scmp.lt.s32.totalorder %s1196_s10, %s1880_s29 }
 0x105   : > { %1499 = vmatprep.mubr.msk.f32.mxu0 %vm2017_vm0, %v2018_v1  ;;  %1537 = vmatpush3.bf16.msra.mxu0 %v1536_v27  ;;  %v1437_v58 = vld [vmem:[%s2656_s24] ss:$0 sm:$0xff]  ;;  %p1877_p3 = pnand %p1876_p13, %p2659_p12  ;;  %p1883_p9 = scmp.lt.s32.totalorder %s1881_s9, %s1875_s1 }
 0x106   : > { %1538 = vmatprep.subr.bf16.mxu0 %v2016_v0 }
 0x107   : > { %p1878_p0 = pneg %p1877_p3  ;;  %p1884_p5 = por %p1883_p9, %p1882_p11 }
 0x109   : > { %1540 = vmatpush3.bf16.msra.mxu0 %v1539_v29  ;;  %p1885_p7 = pnand %p1884_p5, %p1878_p0 }
 0x10a   : > { %1541 = vmatprep.subr.bf16.mxu0 %v2016_v0 }
 0x10c   : > { %1500 = vmatmul.mubr.msk.f32.vlgmr.msra.gmra.mrb[2].mxu0 %vm654_vm1, %v642_v30 }
 0x10d   : > { %1520 = vmatprep.mubr.msk.f32.mxu0 %vm2017_vm0, %v2018_v1  ;;  %1543 = vmatpush3.bf16.msra.mxu0 %v1542_v48 }
 0x10e   : > { %1544 = vmatprep.subr.bf16.mxu0 %v2016_v0 }
 0x111   : > { %1546 = vmatpush3.bf16.msra.mxu0 %v1545_v54 }
 0x1d6   : > { %v808_v18 = vpop.f32.mrb[0].mxu1 }
 0x1d7   : > { %v809_v19 = vadd.f32 %v1430_v16, %v808_v18  ;;  %v1490_v20 = vpop.f32.mrb[1].mxu1  ;;  %v724_v21 = vpop.f32.mrb[0].mxu0 }
 0x1d8   : > { %v725_v22 = vadd.f32 %v1428_v17, %v724_v21  ;;  %v1479_v23 = vpop.f32.mrb[1].mxu0 }
 0x1d9   : > { %1503 = vmatpush3.xpose.msk.msra.mxu1 %vm654_vm1, %v809_v19 }
 0x1da   : > { %1507 = vmatprep.subr.mxu1 %v2018_v1 }
 0x1dc   : > { %1505 = vmatmul.mubr.msk.f32.vlgmr.msra.gmra.mrb[2].mxu1 %vm654_vm1, %v725_v22 }
 0x1dd   : > { %1509 = vmatprep.mubr.msk.f32.mxu1 %vm2017_vm0, %v2018_v1 }
 0x1df   : > { %v892_v42 = vpop.f32.mrb[2].mxu0 }
 0x1e0   : > { %v1501_v44 = vpop.f32.mrb[3].mxu0  ;;  %v893_v45 = vadd.f32 %v1432_v43, %v892_v42 }
 0x1e2   : > { %1508 = vmatpush3.msra.mxu1 %v893_v45 }
 0x2af   : > { %v968_v32 = vpop.f32.mrb[2].mxu1 }
 0x2b0   : > { %v972_v33 = vmul.f32 0.35355338, %v968_v32  ;;  %v1506_v34 = vpop.f32.mrb[3].mxu1 }
 0x2b2   : > { %v975_v35 = vsel %vm974_vm2, 1e-09, %v972_v33 }
 0x2b3   : > { %v977_v36 = vsel %vm976_vm3, %v975_v35, -inf }
 0x2b4   : > { %978 = vmax.xlane.f32.xlu0 %v977_v36 }
 0x341   : > { %v979_v37 = vpop.xlane.xlu0 %978 }
 0x342   : > { %v980_v38 = vsub.f32 %v975_v35, %v979_v37 }
 0x344   : > { %v981_v39 = vmul.f32 1.442695, %v980_v38 }
 0x346   : > { %1665 = vpow2.f32 %v981_v39 }
 0x350   : > { %v1666_v40 = vpop.eup %1665 }
 0x351   : > { %v983_v41 = vsel %vm976_vm3, %v1666_v40, 0.0 }
 0x352   : > { %984 = vadd.xlane.f32.xlu0 %v983_v41 }
 0x3df   : > { %v985_v49 = vpop.xlane.xlu0 %984 }
 0x3e0   : > { %1667 = vrcp.f32 %v985_v49 }
 0x3ea   : > { %v1668_v50 = vpop.eup %1667 }
 0x3eb   : > { %v987_v51 = vmul.f32 %v1668_v50, %v1666_v40 }
 0x3ed   : > { %1510 = vmatmul.mubr.msk.f32.vlgmr.msra.gmra.mrb[4].mxu1 %vm976_vm3, %v987_v51  ;;  %988 = vst.msk [vmem:[%s639_s15] sm:$0xff] %vm976_vm3, %v987_v51 }
 0x4c0   : > { %v1058_v55 = vpop.f32.mrb[4].mxu1 }
 0x4c1   : > { %v1059_v56 = vadd.f32 %v1058_v55, %v2437_v15  ;;  %v1511_v57 = vpop.f32.mrb[5].mxu1 }
 0x4c3   : > { %1521 = vmatmul.mubr.msk.f32.vlgmr.msra.gmra.mrb[4].mxu0 %vm654_vm1, %v1059_v56 }
 0x596   : > { %v1142_v59 = vpop.f32.mrb[4].mxu0 }
 0x597   : > { %v1143_v60 = vadd.f32 %v1437_v58, %v1142_v59  ;;  %v1522_v61 = vpop.f32.mrb[5].mxu0 }
 0x599   : > { %v1146_v62 = vsel %vm654_vm1, %v1143_v60, 0.0 }
 0x59a   : > { %1147 = vadd.xlane.f32.xlu1 %v1146_v62 }
 0x627   : > { %v1148_v63 = vpop.xlane.xlu1 %1147 }
 0x628   : > { %v1150_v0 = vmul.f32 0.03125, %v1148_v63 }
 0x62a   : > { %v1151_v1 = vsub.f32 %v1143_v60, %v1150_v0 }
 0x62c   : > { %v1152_v2 = vmul.f32 %v1151_v1, %v1151_v1 }
 0x62e   : > { %v1153_v3 = vsel %vm654_vm1, %v1152_v2, 0.0 }
 0x62f   : > { %1154 = vadd.xlane.f32.xlu1 %v1153_v3 }
 0x630   : > { %1888 = shalt.err (!%p1885_p7)
}
 0x631   : > { %s1889_s15 = scalar_lea.hbm %s2496_s21, 128  ;;  %s1893_s25 = scalar_lea.hbm %s2658_s12, 256 }
 0x632   : > { %p1890_p10 = scmp.ne.s32.totalorder %s2496_s21, %s1889_s15  ;;  %p1894_p4 = scmp.lt.u32.totalorder %s2496_s21, %s2658_s12 }
 0x633   : > { %p1895_p1 = scmp.lt.u32.totalorder %s1893_s25, %s1889_s15  ;;  %p1897_p13 = scmp.lt.u32.totalorder %s1889_s15, %s2496_s21 }
 0x634   : > { %p1891_p6 = pnand %p1890_p10, %p2659_p12 }
 0x635   : > { %p1896_p8 = por %p1895_p1, %p1894_p4 }
 0x636   : > { %p1892_p2 = pneg %p1891_p6 }
 0x637   : > { %p1898_p3 = por %p1897_p13, %p1896_p8 }
 0x639   : > { %p1899_p0 = pnand %p1898_p3, %p1892_p2 }
 0x63b   : > { %1902 = shalt.err (!%p1899_p0)
}
 0x63c   : > { %1568 = dma.vmem_to_hbm [thread:$0]  (%p2659_p12), %s1196_s10, 128, %s2496_s21, %s1167_s13  }
 0x63d   : > { %s632_s24 = scalar_lea.vmem [#allocation14], %s2399_s22  ;;  %s2660_s19 = sld [smem:[#allocation38_spill]] }
 0x63e   : > { %s1181_s11 = sshll.u32 %s632_s24, 4  ;;  %s1162_s21 = scalar_lea.sflag [#allocation4], %s2396_s28  ;;  %s2524_s11 = int_to_ptr.vmem [resolvable:$true] %s1181_s11 }
 0x63f   : > { %s1903_s10 = scalar_lea.vmem %s2524_s11, 128  ;;  %s2020_s22 = smov [#allocation14]  }
 0x640   : > { %p1904_p11 = scmp.ne.s32.totalorder %s2524_s11, %s1903_s10  ;;  %s1907_s17 = sshll.u32 %s2020_s22, 4  ;;  %s1908_s17 = int_to_ptr.vmem [resolvable:$false] %s1907_s17 }
 0x641   : > { %s1909_s13 = scalar_lea.vmem %s1908_s17, 256  ;;  %p1910_p7 = scmp.lt.s32.totalorder %s2524_s11, %s1908_s17 }
 0x642   : > { %p1905_p9 = pnand %p1904_p11, %p2659_p12  ;;  %p1911_p10 = scmp.lt.s32.totalorder %s1909_s13, %s1903_s10 }
 0x643   : > { %s2522_s29 = scalar_lea.hbm %s2660_s19, %s1441_s16 }
 0x644   : > { %p1906_p5 = pneg %p1905_p9  ;;  %p1912_p6 = por %p1911_p10, %p1910_p7 }
 0x646   : > { %p1913_p2 = pnand %p1912_p6, %p1906_p5 }
 0x6bc   : > { %v1155_v4 = vpop.xlane.xlu1 %1154 }
 0x6bd   : > { %v1156_v5 = vmul.f32 0.03125, %v1155_v4 }
 0x6bf   : > { %v1157_v6 = vadd.f32 1e-05, %v1156_v5 }
 0x6c1   : > { %1669 = vrsqrt.f32 %v1157_v6 }
 0x6cb   : > { %v1670_v7 = vpop.eup %1669 }
 0x6cc   : > { %v1159_v8 = vmul.f32 %v1670_v7, %v1151_v1 }
 0x6ce   : > { %1160 = vst.msk [vmem:[%s632_s24] sm:$0xff] %vm654_vm1, %v1159_v8 }
 0x6cf   : > { %1916 = shalt.err (!%p1913_p2)
}
 0x6d0   : > { %s1917_s28 = scalar_lea.hbm %s2522_s29, 128  ;;  %s1921_s15 = scalar_lea.hbm %s2660_s19, 256 }
 0x6d1   : > { %p1918_p4 = scmp.ne.s32.totalorder %s2522_s29, %s1917_s28  ;;  %p1922_p13 = scmp.lt.u32.totalorder %s2522_s29, %s2660_s19 }
 0x6d2   : > { %p1923_p3 = scmp.lt.u32.totalorder %s1921_s15, %s1917_s28  ;;  %p1925_p11 = scmp.lt.u32.totalorder %s1917_s28, %s2522_s29 }
 0x6d3   : > { %p1919_p1 = pnand %p1918_p4, %p2659_p12 }
 0x6d4   : > { %p1924_p0 = por %p1923_p3, %p1922_p13 }
 0x6d5   : > { %p1920_p8 = pneg %p1919_p1 }
 0x6d6   : > { %p1926_p9 = por %p1925_p11, %p1924_p0 }
 0x6d8   : > { %p1927_p5 = pnand %p1926_p9, %p1920_p8 }
 0x6da   : > { %1930 = shalt.err (!%p1927_p5)
}
 0x6db   : > { %1567 = dma.vmem_to_hbm [thread:$0]  (%p2659_p12), %s2524_s11, 128, %s2522_s29, %s1162_s21  }
 0x6dc PF: > { %s2661_s25 = sld [smem:[#allocation24_spill]]  ;;  %s2662_s0 = sld [smem:[#allocation27_spill]] }
 0x6dd   : > { %p2664_p10 = scmp.ge.s32.totalorder %s2005_s30, 2 }
 0x6e2   : > { %s1207_s6 = sand.u32 1, %s2661_s25   ;;  %p2663_p7 = scmp.ne.s32.totalorder %s2662_s0, 0 }
 0x6e3   : > { %s1208_s24 = scalar_lea.sflag [#allocation4], %s1207_s6 }
 0x6e4   : > { %p1595_p6 = pnand %p2664_p10, %p2663_p7 }
 0x6e6   : > { %1976 = dma.done.wait (!%p1595_p6), %s1208_s24, 128  }
 0x6e7   : > { %1978 = vsyncadd (!%p1595_p6), %s1208_s24, 4294967168  ;;  %s1217_s20 = scalar_lea.sflag [#allocation16], %s1207_s6 }
 0x6e8   : > { %1980 = dma.done.wait (!%p1595_p6), %s1217_s20, 128  }
 0x6e9   : > { %1982 = vsyncadd (!%p1595_p6), %s1217_s20, 4294967168  ;;  %s40_s30 = sadd.s32 1, %s2005_s30   ;;  %s2665_s14 = sld [smem:[#allocation30_spill]] }
 0x6ea   : > { %p37_p2 = scmp.ge.s32.totalorder %s40_s30, 4   ;;  %s2666_s28 = sld [smem:[#allocation26_spill]] }
 0x6eb   : > { %s2667_s29 = sld [smem:[#allocation28_spill]]  ;;  %s2668_s25 = smov %s1989_s26 }
 0x6ec   : > { %s2669_s26 = smov %s1993_s27  ;;  %39 = sbr.rel (!%p37_p2) target bundleno = 23 (0x17), region = 179 }
 0x6ef   : > { %s2670_s27 = smov %s2665_s14 }
 0x6f3   :  { %1222 = vsyncpa [#allocation3], 1 }
 0x6f4   :  { %1224 = vsyncpa [#allocation3 + $0x1], 1 }
 0x6f5   :  { %1225 = vsyncpa [#allocation6], 1 }
 0x6f6   :  { %1227 = vsyncpa [#allocation6 + $0x1], 1 }
 0x6f7   :  { %1228 = vsyncpa [#allocation9], 1 }
 0x6f8   :  { %1230 = vsyncpa [#allocation9 + $0x1], 1 }
 0x6f9   :  { %1231 = vsyncpa [#allocation12], 1 }
 0x6fa   :  { %1232 = vsyncpa [#allocation4], 1 }
 0x6fb   :  { %1234 = vsyncpa [#allocation4 + $0x1], 1 }
 0x6fc   :  { %1235 = vsyncpa [#allocation16], 1 }
 0x6fd   :  { %1237 = vsyncpa [#allocation16 + $0x1], 1 }

</bundles_post_ra>
